<compile_context>
chip_gen: v6e
topology: v6e:2x2x1
jax: 0.10.0
libtpu: 0.0.40
codegen_flags: <defaults>
</compile_context>

<pallas_src>
import jax
import jax.numpy as jnp
from jax.experimental import pallas as pl
from jax.experimental.pallas import tpu as pltpu

HIDDEN = 100          # fixed by the module definition
HIDDEN_PAD = 128      # lane-dense padded hidden size
MAX_TB = 2048         # max batch tile (rows); well within default scoped VMEM
                      # even on v5e (x/out double-buffered + h << 16 MiB)


def _round_up(x, m):
    return ((x + m - 1) // m) * m


def _choose_batch_tile(B):
    """Pick a batch tile (multiple of 8 rows)."""
    if B <= 512:
        # One block for small batches; grid-step overhead dominates otherwise.
        return _round_up(max(B, 8), 8)
    # Keep >= 2 grid steps so v7x's two TensorCores both get work.
    return min(MAX_TB, _round_up(pl.cdiv(B, 2), 16))


def _policy_kernel(x_ref, w1_ref, b1_ref, w2_ref, b2_ref, o_ref):
    # All f32; MXU accumulates in f32. hidden dim is lane-dense (128).
    x = x_ref[...]
    h = jnp.dot(x, w1_ref[...], preferred_element_type=jnp.float32) + b1_ref[...]
    h = jnp.maximum(h, 0.0)
    out = jnp.dot(h, w2_ref[...], preferred_element_type=jnp.float32) + b2_ref[...]
    o_ref[...] = out.astype(o_ref.dtype)


def prepare_policy_params(w1, b1, w2, b2):
    """One-time parameter prep (do NOT call per forward).

    w1: (F_in, 100), b1: (1, 100), w2: (100, F_out), b2: (1, F_out)
    Pads the hidden dim to 128 with zeros (mathematically inert).
    """
    f_in = w1.shape[0]
    f_out = w2.shape[1]
    w1p = jnp.zeros((f_in, HIDDEN_PAD), jnp.float32).at[:, :HIDDEN].set(
        w1.astype(jnp.float32))
    b1p = jnp.zeros((1, HIDDEN_PAD), jnp.float32).at[:, :HIDDEN].set(
        b1.astype(jnp.float32).reshape(1, HIDDEN))
    w2p = jnp.zeros((HIDDEN_PAD, f_out), jnp.float32).at[:HIDDEN, :].set(
        w2.astype(jnp.float32))
    b2p = b2.astype(jnp.float32).reshape(1, f_out)
    return w1p, b1p, w2p, b2p


def policy_forward(x, params):
    """Forward pass of Policy.

    x      : (B, F_in) float32
    params : output of prepare_policy_params
    returns: (B, F_out) in x.dtype
    """
    w1p, b1p, w2p, b2p = params
    B, f_in = x.shape
    f_out = w2p.shape[1]

    tb = _choose_batch_tile(B)
    grid = (pl.cdiv(B, tb),)   # ragged last block handled by Pallas masking

    return pl.pallas_call(
        _policy_kernel,
        out_shape=jax.ShapeDtypeStruct((B, f_out), x.dtype),
        grid=grid,
        in_specs=[
            # Activations: tiled over batch, read once, no pre-pad / pre-cast.
            pl.BlockSpec((tb, f_in), lambda i: (i, 0)),
            # Weights / biases: same block every step -> stay VMEM-resident.
            pl.BlockSpec((f_in, HIDDEN_PAD), lambda i: (0, 0)),
            pl.BlockSpec((1, HIDDEN_PAD), lambda i: (0, 0)),
            pl.BlockSpec((HIDDEN_PAD, f_out), lambda i: (0, 0)),
            pl.BlockSpec((1, f_out), lambda i: (0, 0)),
        ],
        # Unpadded output store: last dim equals the full array dim.
        out_specs=pl.BlockSpec((tb, f_out), lambda i: (i, 0)),
        compiler_params=pltpu.CompilerParams(
            dimension_semantics=("parallel",)),
    )(x, w1p, b1p, w2p, b2p)


def init_policy_params(key, input_features, output_features, dtype=jnp.float32):
    """Deterministic init mirroring torch.nn.Linear's uniform(-1/sqrt(fan_in), ...)."""
    k1, k2, k3, k4 = jax.random.split(key, 4)
    bound1 = 1.0 / jnp.sqrt(jnp.float32(input_features))
    bound2 = 1.0 / jnp.sqrt(jnp.float32(HIDDEN))
    # Stored pre-transposed: (in, out) instead of torch's (out, in).
    w1 = jax.random.uniform(k1, (input_features, HIDDEN), dtype, -bound1, bound1)
    b1 = jax.random.uniform(k2, (1, HIDDEN), dtype, -bound1, bound1)
    w2 = jax.random.uniform(k3, (HIDDEN, output_features), dtype, -bound2, bound2)
    b2 = jax.random.uniform(k4, (1, output_features), dtype, -bound2, bound2)
    return w1, b1, w2, b2


if __name__ == "__main__":
    key = jax.random.PRNGKey(0)
    k_x, k_p = jax.random.split(key)

    batch = 8
    input_features = 32
    output_features = 4

    x = jax.random.normal(k_x, (batch, input_features), jnp.float32)
    w1, b1, w2, b2 = init_policy_params(k_p, input_features, output_features)

    # One-time param prep (hoisted out of the per-call forward path).
    params = prepare_policy_params(w1, b1, w2, b2)

    out = policy_forward(x, params)
    out = jax.block_until_ready(out)

    # Pure-JAX f32 reference.
    ref = jnp.maximum(x @ w1 + b1, 0.0) @ w2 + b2
    assert out.shape == (batch, output_features)
    assert jnp.allclose(out, ref, atol=1e-2, rtol=1e-2), (
        f"max abs err = {jnp.max(jnp.abs(out - ref))}")

    print("KERNEL_OK")
</pallas_src>

<mosaic_0001>
module attributes {stable_mosaic.version = 11 : i64} {
  func.func @_policy_kernel(%arg0: i32, %arg1: memref<8x32xf32, #tpu.memory_space<vmem>>, %arg2: memref<32x128xf32, #tpu.memory_space<vmem>>, %arg3: memref<1x128xf32, #tpu.memory_space<vmem>>, %arg4: memref<128x4xf32, #tpu.memory_space<vmem>>, %arg5: memref<1x4xf32, #tpu.memory_space<vmem>>, %arg6: memref<8x4xf32, #tpu.memory_space<vmem>>) attributes {dimension_semantics = [#tpu.dimension_semantics<parallel>], iteration_bounds = array<i64: 1>, scalar_prefetch = 0 : i64, scratch_operands = 0 : i64, tpu.core_type = #tpu.core_type<tc>, window_params = [{transform_indices = @transform_0, window_bounds = array<i64: 8, 32>}, {pipeline_mode = #tpu.pipeline_mode<synchronous>, transform_indices = @transform_1, window_bounds = array<i64: 32, 128>}, {pipeline_mode = #tpu.pipeline_mode<synchronous>, transform_indices = @transform_2, window_bounds = array<i64: 1, 128>}, {pipeline_mode = #tpu.pipeline_mode<synchronous>, transform_indices = @transform_3, window_bounds = array<i64: 128, 4>}, {pipeline_mode = #tpu.pipeline_mode<synchronous>, transform_indices = @transform_4, window_bounds = array<i64: 1, 4>}, {transform_indices = @transform_5, window_bounds = array<i64: 8, 4>}]} {
    %c0 = arith.constant 0 : index
    %c0_0 = arith.constant 0 : index
    %0 = vector.load %arg1[%c0, %c0_0] : memref<8x32xf32, #tpu.memory_space<vmem>>, vector<8x32xf32>
    %c0_1 = arith.constant 0 : index
    %c0_2 = arith.constant 0 : index
    %1 = vector.load %arg2[%c0_1, %c0_2] : memref<32x128xf32, #tpu.memory_space<vmem>>, vector<32x128xf32>
    %cst = arith.constant dense<0.000000e+00> : vector<8x128xf32>
    %2 = tpu.matmul %0, %1, %cst {dimension_numbers = #tpu.dot_dimension_numbers<[1], [0], [0], [1], [0, 0, 1, 1], [], []>} : vector<8x32xf32>, vector<32x128xf32>, vector<8x128xf32> -> vector<8x128xf32>
    %c0_3 = arith.constant 0 : index
    %c0_4 = arith.constant 0 : index
    %3 = vector.load %arg3[%c0_3, %c0_4] : memref<1x128xf32, #tpu.memory_space<vmem>>, vector<1x128xf32>
    %4 = vector.broadcast %3 : vector<1x128xf32> to vector<8x128xf32>
    %5 = arith.addf %2, %4 : vector<8x128xf32>
    %cst_5 = arith.constant 0.000000e+00 : f32
    %6 = vector.broadcast %cst_5 : f32 to vector<8x128xf32>
    %7 = arith.maximumf %5, %6 : vector<8x128xf32>
    %c0_6 = arith.constant 0 : index
    %c0_7 = arith.constant 0 : index
    %8 = vector.load %arg4[%c0_6, %c0_7] : memref<128x4xf32, #tpu.memory_space<vmem>>, vector<128x4xf32>
    %cst_8 = arith.constant dense<0.000000e+00> : vector<8x4xf32>
    %9 = tpu.matmul %7, %8, %cst_8 {dimension_numbers = #tpu.dot_dimension_numbers<[1], [0], [0], [1], [0, 0, 1, 1], [], []>} : vector<8x128xf32>, vector<128x4xf32>, vector<8x4xf32> -> vector<8x4xf32>
    %c0_9 = arith.constant 0 : index
    %c0_10 = arith.constant 0 : index
    %10 = vector.load %arg5[%c0_9, %c0_10] : memref<1x4xf32, #tpu.memory_space<vmem>>, vector<1x4xf32>
    %11 = vector.broadcast %10 : vector<1x4xf32> to vector<8x4xf32>
    %12 = arith.addf %9, %11 : vector<8x4xf32>
    %c0_11 = arith.constant 0 : index
    %c0_12 = arith.constant 0 : index
    %13 = vector.load %arg6[%c0_11, %c0_12] : memref<8x4xf32, #tpu.memory_space<vmem>>, vector<8x4xf32>
    tpu.vector_store %arg6[%c0_11, %c0_12], %12 {strides = array<i32>} : memref<8x4xf32, #tpu.memory_space<vmem>>, vector<8x4xf32>,
    return
  }
  func.func @transform_0(%arg0: i32) -> (i32, i32) {
    %c0_i32 = arith.constant 0 : i32
    %c0_i32_0 = arith.constant 0 : i32
    return %arg0, %c0_i32 : i32, i32
  }
  func.func @transform_1(%arg0: i32) -> (i32, i32) {
    %c0_i32 = arith.constant 0 : i32
    %c0_i32_0 = arith.constant 0 : i32
    %c0_i32_1 = arith.constant 0 : i32
    return %c0_i32, %c0_i32_0 : i32, i32
  }
  func.func @transform_2(%arg0: i32) -> (i32, i32) {
    %c0_i32 = arith.constant 0 : i32
    %c0_i32_0 = arith.constant 0 : i32
    %c0_i32_1 = arith.constant 0 : i32
    return %c0_i32, %c0_i32_0 : i32, i32
  }
  func.func @transform_3(%arg0: i32) -> (i32, i32) {
    %c0_i32 = arith.constant 0 : i32
    %c0_i32_0 = arith.constant 0 : i32
    %c0_i32_1 = arith.constant 0 : i32
    return %c0_i32, %c0_i32_0 : i32, i32
  }
  func.func @transform_4(%arg0: i32) -> (i32, i32) {
    %c0_i32 = arith.constant 0 : i32
    %c0_i32_0 = arith.constant 0 : i32
    %c0_i32_1 = arith.constant 0 : i32
    return %c0_i32, %c0_i32_0 : i32, i32
  }
  func.func @transform_5(%arg0: i32) -> (i32, i32) {
    %c0_i32 = arith.constant 0 : i32
    %c0_i32_0 = arith.constant 0 : i32
    return %arg0, %c0_i32 : i32, i32
  }
}

</mosaic_0001>

<bundles_post_ra>
// kernel: tpu_custom_call.1
= control target key start
LH: loop header
LB: loop body
LE: loop exit
PB: predicated region body
PF: predicated region fallthrough
CT: control target
= control target key end

     0   :  { %v279_v0 = vmov 0.0   ;;  %vm280_vm0 = vmmov 0   ;;  %vm32_vm1 = vcmask 261120   ;;  %vm200_vm2 = vcmask 31744   ;;  %s407_s1 = inlined_call_operand.vmem [shape: f32[32,128], index: 1, kind: input, shape index: {}]   ;;  %s408_s3 = inlined_call_operand.vmem [shape: f32[128,4], index: 3, kind: input, shape index: {}]   ;;  %s409_s0 = inlined_call_operand.vmem [shape: f32[8,32], index: 0, kind: input, shape index: {}]   ;;  %s410_s2 = inlined_call_operand.vmem [shape: f32[1,128], index: 2, kind: input, shape index: {}]   ;;  %s411_s4 = inlined_call_operand.vmem [shape: f32[1,4], index: 4, kind: input, shape index: {}]   ;;  %s412_s5 = inlined_call_operand.vmem [shape: f32[8,4], index: 5, kind: output, shape index: {}]  }
   0x1   :  { %231 = vmatprep.subr.mxu0 %v279_v0  ;;  %v24_v1 = vld [vmem:[%s407_s1 + $0x18] sm:$0xff]  ;;  %v23_v2 = vld [vmem:[%s407_s1 + $0x10] sm:$0xff]  ;;  %239 = vmatprep.mubr.msk.f32.mxu0 %vm280_vm0, %v279_v0  ;;  %v22_v4 = vld [vmem:[%s407_s1 + $0x8] sm:$0xff] }
   0x2   :  { %232 = vmatpush3.msra.mxu0 %v24_v1  ;;  %242 = vmatprep.subr.mxu1 %v279_v0  ;;  %v122_v3 = vld [vmem:[%s408_s3 + $0x78] sm:$0xff]  ;;  %v121_v5 = vld [vmem:[%s408_s3 + $0x70] sm:$0xff]  ;;  %v120_v6 = vld [vmem:[%s408_s3 + $0x68] sm:$0xff] }
   0x3   :  { %233 = vmatprep.subr.mxu0 %v279_v0  ;;  %243 = vmatpush3.msra.mxu1 %v122_v3  ;;  %v21_v7 = vld [vmem:[%s407_s1] sm:$0xff]  ;;  %v118_v10 = vld [vmem:[%s408_s3 + $0x58] sm:$0xff]  ;;  %v117_v11 = vld [vmem:[%s408_s3 + $0x50] sm:$0xff] }
   0x4   :  { %234 = vmatpush3.msra.mxu0 %v23_v2  ;;  %244 = vmatprep.subr.mxu1 %v279_v0  ;;  %v20_v8 = vld [vmem:[%s409_s0] sm:$0xff]  ;;  %v116_v12 = vld [vmem:[%s408_s3 + $0x48] sm:$0xff]  ;;  %v114_v14 = vld [vmem:[%s408_s3 + $0x38] sm:$0xff] }
   0x5   :  { %235 = vmatprep.subr.mxu0 %v279_v0  ;;  %245 = vmatpush3.msra.mxu1 %v121_v5  ;;  %v119_v9 = vld [vmem:[%s408_s3 + $0x60] sm:$0xff]  ;;  %v113_v15 = vld [vmem:[%s408_s3 + $0x30] sm:$0xff]  ;;  %v112_v16 = vld [vmem:[%s408_s3 + $0x28] sm:$0xff] }
   0x6   :  { %236 = vmatpush3.msra.mxu0 %v22_v4  ;;  %246 = vmatprep.subr.mxu1 %v279_v0  ;;  %v115_v13 = vld [vmem:[%s408_s3 + $0x40] sm:$0xff]  ;;  %v110_v18 = vld [vmem:[%s408_s3 + $0x18] sm:$0xff]  ;;  %v109_v19 = vld [vmem:[%s408_s3 + $0x10] sm:$0xff] }
   0x7   :  { %237 = vmatprep.subr.mxu0 %v279_v0  ;;  %247 = vmatpush3.msra.mxu1 %v120_v6  ;;  %v111_v17 = vld [vmem:[%s408_s3 + $0x20] sm:$0xff]  ;;  %v108_v20 = vld [vmem:[%s408_s3 + $0x8] sm:$0xff] }
   0x8   :  { %238 = vmatpush3.msra.mxu0 %v21_v7  ;;  %248 = vmatprep.subr.mxu1 %v279_v0  ;;  %v107_v21 = vld [vmem:[%s408_s3] sm:$0xff] }
   0x9   :  { %240 = vmatmul.mubr.msk.f32.vlgmr.msra.gmra.mxu0 %vm32_vm1, %v20_v8  ;;  %249 = vmatpush3.msra.mxu1 %v119_v9  ;;  %v206_v22 = vld [vmem:[%s410_s2] ss:$0 sm:$0xff] }
   0xa   :  { %250 = vmatprep.subr.mxu1 %v279_v0  ;;  %274 = vmatprep.mubr.msk.f32.mxu1 %vm280_vm0, %v279_v0  ;;  %v208_v27 = vld [vmem:[%s411_s4] ss:$0 sm:$0xff] }
   0xb   :  { %251 = vmatpush3.msra.mxu1 %v118_v10 }
   0xc   :  { %252 = vmatprep.subr.mxu1 %v279_v0 }
   0xd   :  { %253 = vmatpush3.msra.mxu1 %v117_v11 }
   0xe   :  { %254 = vmatprep.subr.mxu1 %v279_v0 }
   0xf   :  { %255 = vmatpush3.msra.mxu1 %v116_v12 }
  0x10   :  { %256 = vmatprep.subr.mxu1 %v279_v0 }
  0x11   :  { %257 = vmatpush3.msra.mxu1 %v115_v13 }
  0x12   :  { %258 = vmatprep.subr.mxu1 %v279_v0 }
  0x13   :  { %259 = vmatpush3.msra.mxu1 %v114_v14 }
  0x14   :  { %260 = vmatprep.subr.mxu1 %v279_v0 }
  0x15   :  { %261 = vmatpush3.msra.mxu1 %v113_v15 }
  0x16   :  { %262 = vmatprep.subr.mxu1 %v279_v0 }
  0x17   :  { %263 = vmatpush3.msra.mxu1 %v112_v16 }
  0x18   :  { %264 = vmatprep.subr.mxu1 %v279_v0 }
  0x19   :  { %265 = vmatpush3.msra.mxu1 %v111_v17 }
  0x1a   :  { %266 = vmatprep.subr.mxu1 %v279_v0 }
  0x1b   :  { %267 = vmatpush3.msra.mxu1 %v110_v18 }
  0x1c   :  { %268 = vmatprep.subr.mxu1 %v279_v0 }
  0x1d   :  { %269 = vmatpush3.msra.mxu1 %v109_v19 }
  0x1e   :  { %270 = vmatprep.subr.mxu1 %v279_v0 }
  0x1f   :  { %271 = vmatpush3.msra.mxu1 %v108_v20 }
  0x20   :  { %272 = vmatprep.subr.mxu1 %v279_v0 }
  0x21   :  { %273 = vmatpush3.msra.mxu1 %v107_v21 }
  0xc9   :  { %v102_v23 = vpop.f32.mrf.mxu0 }
  0xca   :  { %v103_v24 = vadd.f32 %v206_v22, %v102_v23 }
  0xcb   :  { %v241_v25 = vpop.f32.mrf.mxu0 }
  0xcc   :  { %v106_v26 = vmax.f32 %v103_v24, 0.0 }
  0xce   :  { %275 = vmatmul.mubr.f32.vlgmr.msra.gmra.mxu1 %v106_v26 }
 0x18e   :  { %v196_v28 = vpop.f32.mrf.mxu1 }
 0x18f   :  { %v197_v29 = vadd.f32 %v208_v27, %v196_v28 }
 0x190   :  { %v276_v30 = vpop.f32.mrf.mxu1 }
 0x191   :  { %201 = vst.msk [vmem:[%s412_s5] sm:$0xff] %vm200_vm2, %v197_v29 }

</bundles_post_ra>
